<compile_context>
chip_gen: v7x
topology: tpu7x:2x2x1
jax: 0.10.0
libtpu: 0.0.40
codegen_flags: <defaults>
</compile_context>

<pallas_src>
import functools

import jax
import jax.numpy as jnp
from jax.experimental import pallas as pl
from jax.experimental.pallas import tpu as pltpu


def _round_up(x, m):
    return ((x + m - 1) // m) * m


def embedder_kernel(x_ref, ra_ref, w1_ref, b1_ref, w2x_ref, w2ra_ref, b2_ref,
                    o_ref):
    # h = relu(x @ W1 + b1)   -- f32 accumulation, f32 bias add.
    h = jnp.dot(x_ref[...], w1_ref[...],
                preferred_element_type=jnp.float32) + b1_ref[...]
    h = jnp.maximum(h, 0.0)
    # Linear over cat([h, radii, angles]) as two matmuls (exact).
    out = jnp.dot(h.astype(w2x_ref.dtype), w2x_ref[...],
                  preferred_element_type=jnp.float32)
    out = out + jnp.dot(ra_ref[...], w2ra_ref[...],
                        preferred_element_type=jnp.float32)
    o_ref[...] = (out + b2_ref[...]).astype(o_ref.dtype)


def image_embedder(maps, radii, angles, params, *, tile_n=1024,
                   compute_dtype=None):
    """maps: (N, C, H, W) f32; radii, angles: (N, 1) f32.

    compute_dtype: optionally jnp.bfloat16 on v6e/v7x to halve HBM traffic on
    the dominant x stream (f32 accumulation is kept inside the kernel).
    """
    w1, b1, w2, b2 = params            # w1: (K, inter), w2: (inter+2, out_d)
    N = maps.shape[0]
    K, inter = w1.shape
    out_d = w2.shape[1]

    # ---- operand prep (wrapper-side layout plumbing, not compute hoisting) --
    x = maps.reshape(N, -1)                         # == torch .view(N, -1)
    ra = jnp.concatenate([radii, angles], axis=1)   # (N, 2) single stream

    # Lane-dense output: pad out_d up to a multiple of 128; slice afterwards.
    out_pad = _round_up(max(out_d, 128), 128)
    pad_cols = out_pad - out_d
    w2x = jnp.pad(w2[:inter, :], ((0, 0), (0, pad_cols)))    # (inter, out_pad)
    w2ra = jnp.pad(w2[inter:, :], ((0, 0), (0, pad_cols)))   # (2, out_pad)
    b2_2d = jnp.pad(b2, (0, pad_cols)).reshape(1, out_pad)   # f32 bias
    b1_2d = b1.reshape(1, inter)                             # f32 bias

    # Optional bf16 compute path (keep biases + accumulation in f32).
    if compute_dtype is not None and compute_dtype != jnp.float32:
        x = x.astype(compute_dtype)
        ra = ra.astype(compute_dtype)
        w1 = w1.astype(compute_dtype)
        w2x = w2x.astype(compute_dtype)
        w2ra = w2ra.astype(compute_dtype)

    # Batch tile: large (amortize ~0.35us/step), sublane-aligned for the dtype.
    itemsize = jnp.dtype(x.dtype).itemsize
    sublane = 8 * (4 // itemsize)                   # 8 for f32, 16 for bf16
    tn = min(tile_n, _round_up(N, sublane))
    tn = _round_up(tn, sublane)
    n_pad = _round_up(N, tn)
    if n_pad != N:                                  # pad batch; slice at end
        x = jnp.pad(x, ((0, n_pad - N), (0, 0)))
        ra = jnp.pad(ra, ((0, n_pad - N), (0, 0)))

    grid = (n_pad // tn,)

    cost = pl.CostEstimate(
        flops=2 * n_pad * (K * inter + (inter + 2) * out_pad),
        transcendentals=0,
        bytes_accessed=(n_pad * (K + 2) * itemsize          # streamed inputs
                        + n_pad * out_pad * 4                # output
                        + (K * inter + (inter + 2) * out_pad) * itemsize
                        + (inter + out_pad) * 4))            # biases

    out = pl.pallas_call(
        embedder_kernel,
        out_shape=jax.ShapeDtypeStruct((n_pad, out_pad), jnp.float32),
        grid=grid,
        in_specs=[
            pl.BlockSpec((tn, K), lambda i: (i, 0)),          # x (streamed)
            pl.BlockSpec((tn, 2), lambda i: (i, 0)),          # [radii, angles]
            pl.BlockSpec((K, inter), lambda i: (0, 0)),       # W1 (resident)
            pl.BlockSpec((1, inter), lambda i: (0, 0)),       # b1
            pl.BlockSpec((inter, out_pad), lambda i: (0, 0)), # W2[:inter]
            pl.BlockSpec((2, out_pad), lambda i: (0, 0)),     # W2[inter:]
            pl.BlockSpec((1, out_pad), lambda i: (0, 0)),     # b2
        ],
        out_specs=pl.BlockSpec((tn, out_pad), lambda i: (i, 0)),
        compiler_params=pltpu.CompilerParams(
            dimension_semantics=("parallel",)),
        cost_estimate=cost,
    )(x, ra, w1, b1_2d, w2x, w2ra, b2_2d)

    return out[:N, :out_d]


def reference(maps, radii, angles, params):
    w1, b1, w2, b2 = params
    N = maps.shape[0]
    x = maps.reshape(N, -1)
    h = jnp.maximum(x @ w1 + b1, 0.0)
    cat = jnp.concatenate([h, radii, angles], axis=1)
    return cat @ w2 + b2


if __name__ == "__main__":
    # Module hyper-params (small, consistent with __init__):
    conv_size, conv_depth = 4, 4          # K = 4*4*4 = 64
    intermediate_d, out_d = 32, 16
    N = 8

    K = conv_size * conv_size * conv_depth
    key = jax.random.PRNGKey(0)
    k_maps, k_r, k_a, k_w1, k_b1, k_w2, k_b2 = jax.random.split(key, 7)

    maps = jax.random.normal(k_maps, (N, conv_depth, conv_size, conv_size),
                             dtype=jnp.float32)
    radii = jax.random.normal(k_r, (N, 1), dtype=jnp.float32)
    angles = jax.random.normal(k_a, (N, 1), dtype=jnp.float32)

    # Deterministic synthetic parameters (Linear-like scale).
    w1 = jax.random.normal(k_w1, (K, intermediate_d), jnp.float32) * (K ** -0.5)
    b1 = jax.random.normal(k_b1, (intermediate_d,), jnp.float32) * 0.01
    w2 = jax.random.normal(k_w2, (intermediate_d + 2, out_d), jnp.float32) * (
        (intermediate_d + 2) ** -0.5)
    b2 = jax.random.normal(k_b2, (out_d,), jnp.float32) * 0.01
    params = (w1, b1, w2, b2)

    run = jax.jit(functools.partial(image_embedder, tile_n=1024))
    out = jax.block_until_ready(run(maps, radii, angles, params))

    ref = reference(maps, radii, angles, params)
    assert out.shape == (N, out_d)
    assert jnp.allclose(out, ref, atol=1e-4, rtol=1e-4)
    print("KERNEL_OK")
</pallas_src>

<mosaic_0001>
module attributes {stable_mosaic.version = 11 : i64} {
  func.func @embedder_kernel(%arg0: i32, %arg1: memref<8x64xf32, #tpu.memory_space<vmem>>, %arg2: memref<8x2xf32, #tpu.memory_space<vmem>>, %arg3: memref<64x32xf32, #tpu.memory_space<vmem>>, %arg4: memref<1x32xf32, #tpu.memory_space<vmem>>, %arg5: memref<32x128xf32, #tpu.memory_space<vmem>>, %arg6: memref<2x128xf32, #tpu.memory_space<vmem>>, %arg7: memref<1x128xf32, #tpu.memory_space<vmem>>, %arg8: memref<8x128xf32, #tpu.memory_space<vmem>>) attributes {dimension_semantics = [#tpu.dimension_semantics<parallel>], iteration_bounds = array<i64: 1>, scalar_prefetch = 0 : i64, scratch_operands = 0 : i64, tpu.core_type = #tpu.core_type<tc>, window_params = [{transform_indices = @transform_0, window_bounds = array<i64: 8, 64>}, {transform_indices = @transform_1, window_bounds = array<i64: 8, 2>}, {pipeline_mode = #tpu.pipeline_mode<synchronous>, transform_indices = @transform_2, window_bounds = array<i64: 64, 32>}, {pipeline_mode = #tpu.pipeline_mode<synchronous>, transform_indices = @transform_3, window_bounds = array<i64: 1, 32>}, {pipeline_mode = #tpu.pipeline_mode<synchronous>, transform_indices = @transform_4, window_bounds = array<i64: 32, 128>}, {pipeline_mode = #tpu.pipeline_mode<synchronous>, transform_indices = @transform_5, window_bounds = array<i64: 2, 128>}, {pipeline_mode = #tpu.pipeline_mode<synchronous>, transform_indices = @transform_6, window_bounds = array<i64: 1, 128>}, {transform_indices = @transform_7, window_bounds = array<i64: 8, 128>}]} {
    %c0 = arith.constant 0 : index
    %c0_0 = arith.constant 0 : index
    %0 = vector.load %arg1[%c0, %c0_0] : memref<8x64xf32, #tpu.memory_space<vmem>>, vector<8x64xf32>
    %c0_1 = arith.constant 0 : index
    %c0_2 = arith.constant 0 : index
    %1 = vector.load %arg3[%c0_1, %c0_2] : memref<64x32xf32, #tpu.memory_space<vmem>>, vector<64x32xf32>
    %cst = arith.constant dense<0.000000e+00> : vector<8x32xf32>
    %2 = tpu.matmul %0, %1, %cst {dimension_numbers = #tpu.dot_dimension_numbers<[1], [0], [0], [1], [0, 0, 1, 1], [], []>} : vector<8x64xf32>, vector<64x32xf32>, vector<8x32xf32> -> vector<8x32xf32>
    %c0_3 = arith.constant 0 : index
    %c0_4 = arith.constant 0 : index
    %3 = vector.load %arg4[%c0_3, %c0_4] : memref<1x32xf32, #tpu.memory_space<vmem>>, vector<1x32xf32>
    %4 = vector.broadcast %3 : vector<1x32xf32> to vector<8x32xf32>
    %5 = arith.addf %2, %4 : vector<8x32xf32>
    %cst_5 = arith.constant 0.000000e+00 : f32
    %6 = vector.broadcast %cst_5 : f32 to vector<8x32xf32>
    %7 = arith.maximumf %5, %6 : vector<8x32xf32>
    %c0_6 = arith.constant 0 : index
    %c0_7 = arith.constant 0 : index
    %8 = vector.load %arg5[%c0_6, %c0_7] : memref<32x128xf32, #tpu.memory_space<vmem>>, vector<32x128xf32>
    %cst_8 = arith.constant dense<0.000000e+00> : vector<8x128xf32>
    %9 = tpu.matmul %7, %8, %cst_8 {dimension_numbers = #tpu.dot_dimension_numbers<[1], [0], [0], [1], [0, 0, 1, 1], [], []>} : vector<8x32xf32>, vector<32x128xf32>, vector<8x128xf32> -> vector<8x128xf32>
    %c0_9 = arith.constant 0 : index
    %c0_10 = arith.constant 0 : index
    %10 = vector.load %arg2[%c0_9, %c0_10] : memref<8x2xf32, #tpu.memory_space<vmem>>, vector<8x2xf32>
    %c0_11 = arith.constant 0 : index
    %c0_12 = arith.constant 0 : index
    %11 = vector.load %arg6[%c0_11, %c0_12] : memref<2x128xf32, #tpu.memory_space<vmem>>, vector<2x128xf32>
    %cst_13 = arith.constant dense<0.000000e+00> : vector<8x128xf32>
    %12 = tpu.matmul %10, %11, %cst_13 {dimension_numbers = #tpu.dot_dimension_numbers<[1], [0], [0], [1], [0, 0, 1, 1], [], []>} : vector<8x2xf32>, vector<2x128xf32>, vector<8x128xf32> -> vector<8x128xf32>
    %13 = arith.addf %9, %12 : vector<8x128xf32>
    %c0_14 = arith.constant 0 : index
    %c0_15 = arith.constant 0 : index
    %14 = vector.load %arg7[%c0_14, %c0_15] : memref<1x128xf32, #tpu.memory_space<vmem>>, vector<1x128xf32>
    %15 = vector.broadcast %14 : vector<1x128xf32> to vector<8x128xf32>
    %16 = arith.addf %13, %15 : vector<8x128xf32>
    %c0_16 = arith.constant 0 : index
    %c0_17 = arith.constant 0 : index
    %17 = vector.load %arg8[%c0_16, %c0_17] : memref<8x128xf32, #tpu.memory_space<vmem>>, vector<8x128xf32>
    tpu.vector_store %arg8[%c0_16, %c0_17], %16 {strides = array<i32>} : memref<8x128xf32, #tpu.memory_space<vmem>>, vector<8x128xf32>,
    return
  }
  func.func @transform_0(%arg0: i32) -> (i32, i32) {
    %c0_i32 = arith.constant 0 : i32
    %c0_i32_0 = arith.constant 0 : i32
    return %arg0, %c0_i32 : i32, i32
  }
  func.func @transform_1(%arg0: i32) -> (i32, i32) {
    %c0_i32 = arith.constant 0 : i32
    %c0_i32_0 = arith.constant 0 : i32
    return %arg0, %c0_i32 : i32, i32
  }
  func.func @transform_2(%arg0: i32) -> (i32, i32) {
    %c0_i32 = arith.constant 0 : i32
    %c0_i32_0 = arith.constant 0 : i32
    %c0_i32_1 = arith.constant 0 : i32
    return %c0_i32, %c0_i32_0 : i32, i32
  }
  func.func @transform_3(%arg0: i32) -> (i32, i32) {
    %c0_i32 = arith.constant 0 : i32
    %c0_i32_0 = arith.constant 0 : i32
    %c0_i32_1 = arith.constant 0 : i32
    return %c0_i32, %c0_i32_0 : i32, i32
  }
  func.func @transform_4(%arg0: i32) -> (i32, i32) {
    %c0_i32 = arith.constant 0 : i32
    %c0_i32_0 = arith.constant 0 : i32
    %c0_i32_1 = arith.constant 0 : i32
    return %c0_i32, %c0_i32_0 : i32, i32
  }
  func.func @transform_5(%arg0: i32) -> (i32, i32) {
    %c0_i32 = arith.constant 0 : i32
    %c0_i32_0 = arith.constant 0 : i32
    %c0_i32_1 = arith.constant 0 : i32
    return %c0_i32, %c0_i32_0 : i32, i32
  }
  func.func @transform_6(%arg0: i32) -> (i32, i32) {
    %c0_i32 = arith.constant 0 : i32
    %c0_i32_0 = arith.constant 0 : i32
    %c0_i32_1 = arith.constant 0 : i32
    return %c0_i32, %c0_i32_0 : i32, i32
  }
  func.func @transform_7(%arg0: i32) -> (i32, i32) {
    %c0_i32 = arith.constant 0 : i32
    %c0_i32_0 = arith.constant 0 : i32
    return %arg0, %c0_i32 : i32, i32
  }
}

</mosaic_0001>

<bundles_post_ra>
// kernel: image_embedder.1
= control target key start
LH: loop header
LB: loop body
LE: loop exit
PB: predicated region body
PF: predicated region fallthrough
CT: control target
= control target key end

     0   :  { %v402_v3 = vmov 0.0|0.0   ;;  %vm403_vm0 = vmmov 0   ;;  %v404_v6 = vmov 0.0   ;;  %vm128_vm1 = vcmask 1041408   ;;  %s512_s0 = inlined_call_operand.vmem [shape: f32[8,64], index: 0, kind: input, shape index: {}]   ;;  %s513_s1 = inlined_call_operand.vmem [shape: f32[8,2], index: 1, kind: input, shape index: {}]   ;;  %s514_s2 = inlined_call_operand.vmem [shape: f32[64,32], index: 2, kind: input, shape index: {}]   ;;  %s515_s3 = inlined_call_operand.vmem [shape: f32[1,32], index: 3, kind: input, shape index: {}]   ;;  %s516_s4 = inlined_call_operand.vmem [shape: f32[32,128], index: 4, kind: input, shape index: {}]   ;;  %s517_s5 = inlined_call_operand.vmem [shape: f32[2,128], index: 5, kind: input, shape index: {}]   ;;  %s518_s6 = inlined_call_operand.vmem [shape: f32[1,128], index: 6, kind: input, shape index: {}]   ;;  %s519_s7 = inlined_call_operand.hbm [shape: f32[8,128], index: 7, kind: output, shape index: {}]  }
   0x1   :  { %v28_v0 = vld [vmem:[%s514_s2] sm:$0xff]  ;;  %v29_v1 = vld [vmem:[%s514_s2 + $0x8] sm:$0xff]  ;;  %v30_v2 = vld [vmem:[%s514_s2 + $0x10] sm:$0xff]  ;;  %356 = vmatprep.subr.bf16.mxu0 %v402_v3  ;;  %337 = vmatprep.mubr.msk.f32.mxu0 %vm403_vm0, %v404_v6  ;;  %vm124_vm2 = vcmask 15360  }
   0x2   :  { %v357_v4 = vpack.c.bf16 %v29_v1, %v28_v0  ;;  %v31_v5 = vld [vmem:[%s514_s2 + $0x18] sm:$0xff]  ;;  %v32_v7 = vld [vmem:[%s514_s2 + $0x20] sm:$0xff]  ;;  %340 = vmatprep.subr.mxu1 %v404_v6  ;;  %342 = vmatprep.mubr.msk.f32.mxu1 %vm403_vm0, %v404_v6  ;;  %v33_v12 = vld [vmem:[%s514_s2 + $0x28] sm:$0xff] }
   0x3   :  { %v360_v8 = vpack.c.bf16 %v31_v5, %v30_v2  ;;  %v123_v9 = vld [vmem:[%s517_s5] sm:$0x3]  ;;  %v119_v13 = vld [vmem:[%s516_s4 + $0x8] sm:$0xff] }
   0x4   :  { %358 = vmatpush3.bf16.msra.mxu0 %v357_v4  ;;  %v122_v10 = vld [vmem:[%s513_s1] sm:$0xff]  ;;  %341 = vmatpush3.msk.msra.mxu1 %vm128_vm1, %v123_v9 }
   0x5   :  { %v118_v11 = vld [vmem:[%s516_s4] sm:$0xff]  ;;  %359 = vmatprep.subr.bf16.mxu0 %v402_v3 }
   0x6   :  { %12 = vsyncpa [#allocation3], 0  ;;  %343 = vmatmul.mubr.msk.f32.vlgmr.msra.gmra.mrb[0].mxu1 %vm124_vm2, %v122_v10  ;;  %368 = vmatprep.subr.bf16.mxu1 %v402_v3  ;;  %v369_v14 = vpack.c.bf16 %v119_v13, %v118_v11  ;;  %v363_v15 = vpack.c.bf16 %v33_v12, %v32_v7  ;;  %v34_v16 = vld [vmem:[%s514_s2 + $0x30] sm:$0xff]  ;;  %v35_v17 = vld [vmem:[%s514_s2 + $0x38] sm:$0xff]  ;;  %vm43_vm3 = vcmask 523264   ;;  %vm202_vm4 = vcmask 261120  }
   0x7   :  { %353 = vmatprep.mubr.msk.f32.mxu1 %vm403_vm0, %v404_v6  ;;  %v366_v18 = vpack.c.bf16 %v35_v17, %v34_v16  ;;  %v27_v19 = vld [vmem:[%s512_s0] sm:$0xff]  ;;  %v120_v20 = vld [vmem:[%s516_s4 + $0x10] sm:$0xff]  ;;  %v121_v21 = vld [vmem:[%s516_s4 + $0x18] sm:$0xff]  ;;  %s405_s4 = smov [#allocation2]  }
   0x8   :  { %361 = vmatpush3.bf16.msra.mxu0 %v360_v8  ;;  %370 = vmatpush3.bf16.msra.mxu1 %v369_v14  ;;  %v372_v22 = vpack.c.bf16 %v121_v21, %v120_v20  ;;  %v299_v25 = vld [vmem:[%s515_s3] ss:$0 sm:$0xff]  ;;  %s291_s8 = sshll.u32 %s405_s4, 4  ;;  %s292_s8 = int_to_ptr.vmem [resolvable:$true] %s291_s8 }
   0x9   :  { %362 = vmatprep.subr.bf16.mxu0 %v402_v3  ;;  %371 = vmatprep.subr.bf16.mxu1 %v402_v3  ;;  %v304_v31 = vld [vmem:[%s518_s6] ss:$0 sm:$0xff]  ;;  %s378_s9 = scalar_lea.vmem %s292_s8, 128  ;;  %p383_p1 = scmp.lt.s32.totalorder %s292_s8, %s292_s8 }
   0xa   :  { %p379_p0 = scmp.ne.s32.totalorder %s292_s8, %s378_s9  ;;  %p384_p2 = scmp.lt.s32.totalorder %s378_s9, %s378_s9 }
   0xc   :  { %364 = vmatpush3.bf16.msra.mxu0 %v363_v15  ;;  %373 = vmatpush3.bf16.msra.mxu1 %v372_v22  ;;  %p385_p3 = por %p384_p2, %p383_p1 }
   0xd   :  { %365 = vmatprep.subr.bf16.mxu0 %v402_v3 }
   0xe   :  { %p386_p4 = pnand %p385_p3, %p379_p0 }
  0x10   :  { %367 = vmatpush3.bf16.msra.mxu0 %v366_v18 }
  0x13   :  { %338 = vmatmul.mubr.msk.f32.vlgmr.msra.gmra.mrb[0].mxu0 %vm43_vm3, %v27_v19 }
  0xd9   :  { %v198_v23 = vpop.f32.mrb[0].mxu1 }
  0xda   :  { %v344_v24 = vpop.f32.mrb[1].mxu1 }
  0xe6   :  { %v113_v26 = vpop.f32.mrb[0].mxu0 }
  0xe7   :  { %v114_v27 = vadd.f32 %v299_v25, %v113_v26  ;;  %v339_v28 = vpop.f32.mrb[1].mxu0 }
  0xe9   :  { %v117_v29 = vmax.f32 %v114_v27, 0.0 }
  0xeb   :  { %354 = vmatmul.mubr.msk.f32.vlgmr.msra.gmra.mrb[2].mxu1 %vm202_vm4, %v117_v29 }
 0x1be   :  { %v272_v30 = vpop.f32.mrb[2].mxu1 }
 0x1bf   :  { %v273_v32 = vadd.f32 %v272_v30, %v198_v23  ;;  %v355_v33 = vpop.f32.mrb[3].mxu1 }
 0x1c1   :  { %v283_v34 = vadd.f32 %v304_v31, %v273_v32 }
 0x1c3   :  { %284 = vst [vmem:[#allocation2] sm:$0xff] %v283_v34 }
 0x1c4   :  { %389 = shalt.err (!%p386_p4)
}
 0x1c5   :  { %s390_s11 = scalar_lea.hbm %s519_s7, 128 }
 0x1c6   :  { %p391_p5 = scmp.ne.s32.totalorder %s519_s7, %s390_s11  ;;  %p394_p6 = scmp.lt.u32.totalorder %s390_s11, %s519_s7 }
 0x1c8   :  { %p396_p7 = pnand %p394_p6, %p391_p5 }
 0x1ca   :  { %399 = shalt.err (!%p396_p7)
}
 0x1cb   :  { %294 = dma.vmem_to_hbm [thread:$0]  %s292_s8, 128, %s519_s7, [#allocation3]  }
 0x1cc   :  { %400 = dma.done.wait [#allocation3], 128  }
 0x1cd   :  { %401 = vsyncadd [#allocation3], 4294967168 }
 0x1ce   :  { %298 = vsyncpa [#allocation3], 1 }

</bundles_post_ra>
